<compile_context>
chip_gen: v5e
topology: v5e:2x2
jax: 0.10.0
libtpu: 0.0.40
codegen_flags: <defaults>
</compile_context>

<pallas_src>
import functools

import jax
import jax.numpy as jnp
from jax.experimental import pallas as pl
from jax.experimental.pallas import tpu as pltpu

LANE = 128
SUBLANE = 8


def _round_up(x, m):
    return ((x + m - 1) // m) * m


def mlp2_kernel(x_ref, w1_ref, b1_ref, w2_ref, b2_ref, w3_ref, b3_ref, o_ref,
                *, compute_dtype):
    # fc1 + tanh   (x_ref already holds [x | t | 0-pad]; no in-kernel concat)
    x = x_ref[...].astype(compute_dtype)
    h = jnp.dot(x, w1_ref[...].astype(compute_dtype),
                preferred_element_type=jnp.float32) + b1_ref[...]
    h = jnp.tanh(h)
    # fc2 + tanh
    h = jnp.dot(h.astype(compute_dtype), w2_ref[...].astype(compute_dtype),
                preferred_element_type=jnp.float32) + b2_ref[...]
    h = jnp.tanh(h)
    # fc3 (no activation) -> lane-dense (TM, 128) store
    o_ref[...] = (jnp.dot(h.astype(compute_dtype), w3_ref[...].astype(compute_dtype),
                          preferred_element_type=jnp.float32)
                  + b3_ref[...]).astype(o_ref.dtype)


def mlp2_forward(x, t, params, *, block_rows=512, compute_dtype=jnp.float32):
    """x: (B, input_dim), t: (B, 1). Returns (B, input_dim) float32.

    compute_dtype=jnp.bfloat16 halves operand traffic / doubles MXU rate on
    v6e & v7x (accumulation and tanh stay in f32). Keep the f32 default on v5e.
    """
    w1, b1, w2, b2, w3, b3 = params
    B, input_dim = x.shape
    k1, H = w1.shape              # (input_dim + 1, hidden)
    out_dim = w3.shape[1]

    # Lane-align concatenated-input (K) and output (N) feature dims to 128 so
    # loads / stores are unmasked and the MXU sees aligned operands.
    k_pad = _round_up(k1, LANE)
    n_pad = _round_up(out_dim, LANE)

    # Batch tiling: large M tiles, parallel grid over batch.
    tm = min(block_rows, _round_up(B, SUBLANE))
    b_pad = _round_up(B, tm)

    # Concat + pad in the wrapper (one cheap XLA memory op; avoids an odd
    # 9-lane concat and cross-lane shuffles inside the kernel).
    inp = jnp.concatenate([x, t], axis=1).astype(jnp.float32)
    inp = jnp.pad(inp, ((0, b_pad - B), (0, k_pad - k1)))

    w1p = jnp.pad(w1, ((0, k_pad - k1), (0, 0)))         # zero rows -> no-op
    w3p = jnp.pad(w3, ((0, 0), (0, n_pad - out_dim)))    # zero cols
    b3p = jnp.pad(b3, ((0, 0), (0, n_pad - out_dim)))

    grid = (b_pad // tm,)

    flops = 2 * b_pad * (k_pad * H + H * H + H * n_pad)
    transcendentals = 2 * b_pad * H
    bytes_accessed = 4 * (b_pad * k_pad + b_pad * n_pad
                          + k_pad * H + H * H + H * n_pad + 2 * H + n_pad)

    kernel = functools.partial(mlp2_kernel, compute_dtype=compute_dtype)

    # Constant index maps: weights / biases DMA'd once, VMEM-resident across
    # every batch tile.
    def const(shape):
        return pl.BlockSpec(shape, lambda i: (0, 0))

    out = pl.pallas_call(
        kernel,
        out_shape=jax.ShapeDtypeStruct((b_pad, n_pad), jnp.float32),
        grid=grid,
        in_specs=[
            pl.BlockSpec((tm, k_pad), lambda i: (i, 0)),   # [x | t] tile
            const((k_pad, H)),                             # w1 (padded rows)
            const((1, H)),                                 # b1
            const((H, H)),                                 # w2
            const((1, H)),                                 # b2
            const((H, n_pad)),                             # w3 (padded cols)
            const((1, n_pad)),                             # b3 (padded cols)
        ],
        out_specs=pl.BlockSpec((tm, n_pad), lambda i: (i, 0)),
        compiler_params=pltpu.CompilerParams(
            dimension_semantics=("parallel",)),
        cost_estimate=pl.CostEstimate(flops=flops,
                                      transcendentals=transcendentals,
                                      bytes_accessed=bytes_accessed),
    )(inp, w1p, b1, w2, b2, w3p, b3p)

    return out[:B, :out_dim]


def init_params(key, input_dim=8, hidden_num=32):
    """Deterministic init mirroring nn.Linear default (uniform +/- 1/sqrt(fan_in)).
    Weights returned as (in_features, out_features); biases as (1, out_features)."""
    def linear(k, fan_in, fan_out):
        kw, kb = jax.random.split(k)
        bound = 1.0 / jnp.sqrt(fan_in)
        w = jax.random.uniform(kw, (fan_in, fan_out), jnp.float32, -bound, bound)
        b = jax.random.uniform(kb, (1, fan_out), jnp.float32, -bound, bound)
        return w, b

    k1, k2, k3 = jax.random.split(key, 3)
    w1, b1 = linear(k1, input_dim + 1, hidden_num)
    w2, b2 = linear(k2, hidden_num, hidden_num)
    w3, b3 = linear(k3, hidden_num, input_dim)
    return (w1, b1, w2, b2, w3, b3)


def reference_forward(x, t, params):
    w1, b1, w2, b2, w3, b3 = params
    inp = jnp.concatenate([x, t], axis=1)
    h = jnp.tanh(inp @ w1 + b1)
    h = jnp.tanh(h @ w2 + b2)
    return h @ w3 + b3


if __name__ == "__main__":
    input_dim = 8
    hidden_num = 32

    key = jax.random.PRNGKey(0)
    kx, kt, kp = jax.random.split(key, 3)
    params = init_params(kp, input_dim=input_dim, hidden_num=hidden_num)

    # Test a sublane-aligned batch and a ragged batch (exercises padding path).
    for batch in (64, 37):
        kxb, ktb = jax.random.split(jax.random.fold_in(kx, batch))
        x = jax.random.normal(kxb, (batch, input_dim), jnp.float32)
        t = jax.random.normal(ktb, (batch, 1), jnp.float32)

        out = jax.block_until_ready(mlp2_forward(x, t, params))
        ref = reference_forward(x, t, params)

        assert out.shape == (batch, input_dim)
        assert jnp.allclose(out, ref, atol=1e-5, rtol=1e-5), \
            float(jnp.max(jnp.abs(out - ref)))

    print("KERNEL_OK")
</pallas_src>

<mosaic_0001>
module attributes {stable_mosaic.version = 11 : i64} {
  func.func @mlp2_kernel(%arg0: i32, %arg1: memref<64x128xf32, #tpu.memory_space<vmem>>, %arg2: memref<128x32xf32, #tpu.memory_space<vmem>>, %arg3: memref<1x32xf32, #tpu.memory_space<vmem>>, %arg4: memref<32x32xf32, #tpu.memory_space<vmem>>, %arg5: memref<1x32xf32, #tpu.memory_space<vmem>>, %arg6: memref<32x128xf32, #tpu.memory_space<vmem>>, %arg7: memref<1x128xf32, #tpu.memory_space<vmem>>, %arg8: memref<64x128xf32, #tpu.memory_space<vmem>>) attributes {dimension_semantics = [#tpu.dimension_semantics<parallel>], iteration_bounds = array<i64: 1>, scalar_prefetch = 0 : i64, scratch_operands = 0 : i64, tpu.core_type = #tpu.core_type<tc>, window_params = [{transform_indices = @transform_0, window_bounds = array<i64: 64, 128>}, {pipeline_mode = #tpu.pipeline_mode<synchronous>, transform_indices = @transform_1, window_bounds = array<i64: 128, 32>}, {pipeline_mode = #tpu.pipeline_mode<synchronous>, transform_indices = @transform_2, window_bounds = array<i64: 1, 32>}, {pipeline_mode = #tpu.pipeline_mode<synchronous>, transform_indices = @transform_3, window_bounds = array<i64: 32, 32>}, {pipeline_mode = #tpu.pipeline_mode<synchronous>, transform_indices = @transform_4, window_bounds = array<i64: 1, 32>}, {pipeline_mode = #tpu.pipeline_mode<synchronous>, transform_indices = @transform_5, window_bounds = array<i64: 32, 128>}, {pipeline_mode = #tpu.pipeline_mode<synchronous>, transform_indices = @transform_6, window_bounds = array<i64: 1, 128>}, {transform_indices = @transform_7, window_bounds = array<i64: 64, 128>}]} {
    %c0 = arith.constant 0 : index
    %c0_0 = arith.constant 0 : index
    %0 = vector.load %arg1[%c0, %c0_0] : memref<64x128xf32, #tpu.memory_space<vmem>>, vector<64x128xf32>
    %c0_1 = arith.constant 0 : index
    %c0_2 = arith.constant 0 : index
    %1 = vector.load %arg2[%c0_1, %c0_2] : memref<128x32xf32, #tpu.memory_space<vmem>>, vector<128x32xf32>
    %cst = arith.constant dense<0.000000e+00> : vector<64x32xf32>
    %2 = tpu.matmul %0, %1, %cst {dimension_numbers = #tpu.dot_dimension_numbers<[1], [0], [0], [1], [0, 0, 1, 1], [], []>} : vector<64x128xf32>, vector<128x32xf32>, vector<64x32xf32> -> vector<64x32xf32>
    %c0_3 = arith.constant 0 : index
    %c0_4 = arith.constant 0 : index
    %3 = vector.load %arg3[%c0_3, %c0_4] : memref<1x32xf32, #tpu.memory_space<vmem>>, vector<1x32xf32>
    %4 = vector.broadcast %3 : vector<1x32xf32> to vector<64x32xf32>
    %5 = arith.addf %2, %4 : vector<64x32xf32>
    %6 = math.tanh %5 : vector<64x32xf32>
    %c0_5 = arith.constant 0 : index
    %c0_6 = arith.constant 0 : index
    %7 = vector.load %arg4[%c0_5, %c0_6] : memref<32x32xf32, #tpu.memory_space<vmem>>, vector<32x32xf32>
    %cst_7 = arith.constant dense<0.000000e+00> : vector<64x32xf32>
    %8 = tpu.matmul %6, %7, %cst_7 {dimension_numbers = #tpu.dot_dimension_numbers<[1], [0], [0], [1], [0, 0, 1, 1], [], []>} : vector<64x32xf32>, vector<32x32xf32>, vector<64x32xf32> -> vector<64x32xf32>
    %c0_8 = arith.constant 0 : index
    %c0_9 = arith.constant 0 : index
    %9 = vector.load %arg5[%c0_8, %c0_9] : memref<1x32xf32, #tpu.memory_space<vmem>>, vector<1x32xf32>
    %10 = vector.broadcast %9 : vector<1x32xf32> to vector<64x32xf32>
    %11 = arith.addf %8, %10 : vector<64x32xf32>
    %12 = math.tanh %11 : vector<64x32xf32>
    %c0_10 = arith.constant 0 : index
    %c0_11 = arith.constant 0 : index
    %13 = vector.load %arg6[%c0_10, %c0_11] : memref<32x128xf32, #tpu.memory_space<vmem>>, vector<32x128xf32>
    %cst_12 = arith.constant dense<0.000000e+00> : vector<64x128xf32>
    %14 = tpu.matmul %12, %13, %cst_12 {dimension_numbers = #tpu.dot_dimension_numbers<[1], [0], [0], [1], [0, 0, 1, 1], [], []>} : vector<64x32xf32>, vector<32x128xf32>, vector<64x128xf32> -> vector<64x128xf32>
    %c0_13 = arith.constant 0 : index
    %c0_14 = arith.constant 0 : index
    %15 = vector.load %arg7[%c0_13, %c0_14] : memref<1x128xf32, #tpu.memory_space<vmem>>, vector<1x128xf32>
    %16 = vector.broadcast %15 : vector<1x128xf32> to vector<64x128xf32>
    %17 = arith.addf %14, %16 : vector<64x128xf32>
    %c0_15 = arith.constant 0 : index
    %c0_16 = arith.constant 0 : index
    %18 = vector.load %arg8[%c0_15, %c0_16] : memref<64x128xf32, #tpu.memory_space<vmem>>, vector<64x128xf32>
    tpu.vector_store %arg8[%c0_15, %c0_16], %17 {strides = array<i32>} : memref<64x128xf32, #tpu.memory_space<vmem>>, vector<64x128xf32>,
    return
  }
  func.func @transform_0(%arg0: i32) -> (i32, i32) {
    %c0_i32 = arith.constant 0 : i32
    %c0_i32_0 = arith.constant 0 : i32
    return %arg0, %c0_i32 : i32, i32
  }
  func.func @transform_1(%arg0: i32) -> (i32, i32) {
    %c0_i32 = arith.constant 0 : i32
    %c0_i32_0 = arith.constant 0 : i32
    %c0_i32_1 = arith.constant 0 : i32
    return %c0_i32, %c0_i32_0 : i32, i32
  }
  func.func @transform_2(%arg0: i32) -> (i32, i32) {
    %c0_i32 = arith.constant 0 : i32
    %c0_i32_0 = arith.constant 0 : i32
    %c0_i32_1 = arith.constant 0 : i32
    return %c0_i32, %c0_i32_0 : i32, i32
  }
  func.func @transform_3(%arg0: i32) -> (i32, i32) {
    %c0_i32 = arith.constant 0 : i32
    %c0_i32_0 = arith.constant 0 : i32
    %c0_i32_1 = arith.constant 0 : i32
    return %c0_i32, %c0_i32_0 : i32, i32
  }
  func.func @transform_4(%arg0: i32) -> (i32, i32) {
    %c0_i32 = arith.constant 0 : i32
    %c0_i32_0 = arith.constant 0 : i32
    %c0_i32_1 = arith.constant 0 : i32
    return %c0_i32, %c0_i32_0 : i32, i32
  }
  func.func @transform_5(%arg0: i32) -> (i32, i32) {
    %c0_i32 = arith.constant 0 : i32
    %c0_i32_0 = arith.constant 0 : i32
    %c0_i32_1 = arith.constant 0 : i32
    return %c0_i32, %c0_i32_0 : i32, i32
  }
  func.func @transform_6(%arg0: i32) -> (i32, i32) {
    %c0_i32 = arith.constant 0 : i32
    %c0_i32_0 = arith.constant 0 : i32
    %c0_i32_1 = arith.constant 0 : i32
    return %c0_i32, %c0_i32_0 : i32, i32
  }
  func.func @transform_7(%arg0: i32) -> (i32, i32) {
    %c0_i32 = arith.constant 0 : i32
    %c0_i32_0 = arith.constant 0 : i32
    return %arg0, %c0_i32 : i32, i32
  }
}

</mosaic_0001>

<bundles_post_ra>
// kernel: tpu_custom_call.1
= control target key start
LH: loop header
LB: loop body
LE: loop exit
PB: predicated region body
PF: predicated region fallthrough
CT: control target
= control target key end

     0   :  { %s548_s0 = inlined_call_operand.vmem [shape: f32[64,128], index: 0, kind: input, shape index: {}]   ;;  %s549_s1 = inlined_call_operand.vmem [shape: f32[128,32], index: 1, kind: input, shape index: {}]   ;;  %s550_s2 = inlined_call_operand.vmem [shape: f32[1,32], index: 2, kind: input, shape index: {}]   ;;  %s551_s3 = inlined_call_operand.vmem [shape: f32[32,32], index: 3, kind: input, shape index: {}]   ;;  %s552_s4 = inlined_call_operand.vmem [shape: f32[1,32], index: 4, kind: input, shape index: {}]   ;;  %s553_s5 = inlined_call_operand.vmem [shape: f32[32,128], index: 5, kind: input, shape index: {}]   ;;  %s554_s6 = inlined_call_operand.vmem [shape: f32[1,128], index: 6, kind: input, shape index: {}]   ;;  %s555_s7 = inlined_call_operand.hbm [shape: f32[64,128], index: 7, kind: output, shape index: {}]  }
   0x1   :  { %v50_v0 = vld [vmem:[%s549_s1 + $0x78] sm:$0xff]  ;;  %v49_v1 = vld [vmem:[%s549_s1 + $0x70] sm:$0xff]  ;;  %v48_v2 = vld [vmem:[%s549_s1 + $0x68] sm:$0xff] }
   0x2   :  { %55 = vmatpush.msra.mxu0 %v50_v0  ;;  %301 = vmatpush.msra.mxu3 %v50_v0  ;;  %v47_v3 = vld [vmem:[%s549_s1 + $0x60] sm:$0xff]  ;;  %v46_v4 = vld [vmem:[%s549_s1 + $0x58] sm:$0xff] }
   0x4   :  { %56 = vmatpush.msra.mxu0 %v49_v1  ;;  %302 = vmatpush.msra.mxu3 %v49_v1 }
   0x6   :  { %57 = vmatpush.msra.mxu0 %v48_v2  ;;  %303 = vmatpush.msra.mxu3 %v48_v2 }
   0x8   :  { %58 = vmatpush.msra.mxu0 %v47_v3  ;;  %304 = vmatpush.msra.mxu3 %v47_v3 }
   0x9   :  { %12 = vsyncpa [#allocation3], 0  ;;  %v45_v5 = vld [vmem:[%s549_s1 + $0x50] sm:$0xff]  ;;  %v44_v6 = vld [vmem:[%s549_s1 + $0x48] sm:$0xff]  ;;  %vm112_vm0 = vcmask 261120   ;;  %s273_s21 = sshll.u32 %s555_s7, 4  ;;  %s274_s21 = int_to_ptr.hbm [resolvable:$true] %s273_s21 }
   0xa   :  { %59 = vmatpush.msra.mxu0 %v46_v4  ;;  %305 = vmatpush.msra.mxu3 %v46_v4  ;;  %v43_v7 = vld [vmem:[%s549_s1 + $0x40] sm:$0xff]  ;;  %v42_v8 = vld [vmem:[%s549_s1 + $0x38] sm:$0xff]  ;;  %v41_v9 = vld [vmem:[%s549_s1 + $0x30] sm:$0xff]  ;;  %s382_s22 = smov 128   ;;  %s383_s23 = smov 8  }
   0xb   :  { %v40_v10 = vld [vmem:[%s549_s1 + $0x28] sm:$0xff]  ;;  %v39_v11 = vld [vmem:[%s549_s1 + $0x20] sm:$0xff]  ;;  %v38_v12 = vld [vmem:[%s549_s1 + $0x18] sm:$0xff] }
   0xc   :  { %60 = vmatpush.msra.mxu0 %v45_v5  ;;  %306 = vmatpush.msra.mxu3 %v45_v5  ;;  %v37_v13 = vld [vmem:[%s549_s1 + $0x10] sm:$0xff]  ;;  %v36_v14 = vld [vmem:[%s549_s1 + $0x8] sm:$0xff]  ;;  %v35_v15 = vld [vmem:[%s549_s1] sm:$0xff] }
   0xd   :  { %v27_v16 = vld [vmem:[%s548_s0] sm:$0xff]  ;;  %v32_v17 = vld [vmem:[%s548_s0 + $0x28] sm:$0xff]  ;;  %v33_v19 = vld [vmem:[%s548_s0 + $0x30] sm:$0xff] }
   0xe   :  { %61 = vmatpush.msra.mxu0 %v44_v6  ;;  %307 = vmatpush.msra.mxu3 %v44_v6  ;;  %v28_v18 = vld [vmem:[%s548_s0 + $0x8] sm:$0xff]  ;;  %v29_v20 = vld [vmem:[%s548_s0 + $0x10] sm:$0xff]  ;;  %v34_v21 = vld [vmem:[%s548_s0 + $0x38] sm:$0xff] }
   0xf   :  { %v30_v22 = vld [vmem:[%s548_s0 + $0x18] sm:$0xff]  ;;  %v31_v23 = vld [vmem:[%s548_s0 + $0x20] sm:$0xff]  ;;  %v106_v25 = vld [vmem:[%s551_s3 + $0x10] sm:$0xff] }
  0x10   :  { %62 = vmatpush.msra.mxu0 %v43_v7  ;;  %308 = vmatpush.msra.mxu3 %v43_v7  ;;  %v107_v24 = vld [vmem:[%s551_s3 + $0x18] sm:$0xff]  ;;  %v105_v26 = vld [vmem:[%s551_s3 + $0x8] sm:$0xff]  ;;  %v104_v27 = vld [vmem:[%s551_s3] sm:$0xff] }
  0x11   :  { %149 = vmatpush.msra.mxu1 %v107_v24  ;;  %v320_v28 = vld [vmem:[%s550_s2] ss:$0 sm:$0xff]  ;;  %v189_v53 = vld [vmem:[%s553_s5 + $0x18] sm:$0xff]  ;;  %v188_v54 = vld [vmem:[%s553_s5 + $0x10] sm:$0xff] }
  0x12   :  { %63 = vmatpush.msra.mxu0 %v42_v8  ;;  %309 = vmatpush.msra.mxu3 %v42_v8  ;;  %v187_v55 = vld [vmem:[%s553_s5 + $0x8] sm:$0xff]  ;;  %v186_v56 = vld [vmem:[%s553_s5] sm:$0xff] }
  0x13   :  { %150 = vmatpush.msra.mxu1 %v106_v25  ;;  %230 = vmatpush.msra.mxu2 %v189_v53  ;;  %v321_v57 = vld [vmem:[%s552_s4] ss:$0 sm:$0xff] }
  0x14   :  { %64 = vmatpush.msra.mxu0 %v41_v9  ;;  %310 = vmatpush.msra.mxu3 %v41_v9 }
  0x15   :  { %151 = vmatpush.msra.mxu1 %v105_v26  ;;  %231 = vmatpush.msra.mxu2 %v188_v54 }
  0x16   :  { %65 = vmatpush.msra.mxu0 %v40_v10  ;;  %311 = vmatpush.msra.mxu3 %v40_v10 }
  0x17   :  { %152 = vmatpush.msra.mxu1 %v104_v27  ;;  %232 = vmatpush.msra.mxu2 %v187_v55 }
  0x18   :  { %66 = vmatpush.msra.mxu0 %v39_v11  ;;  %312 = vmatpush.msra.mxu3 %v39_v11 }
  0x19   :  { %233 = vmatpush.msra.mxu2 %v186_v56 }
  0x1a   :  { %67 = vmatpush.msra.mxu0 %v38_v12  ;;  %313 = vmatpush.msra.mxu3 %v38_v12 }
  0x1c   :  { %68 = vmatpush.msra.mxu0 %v37_v13  ;;  %314 = vmatpush.msra.mxu3 %v37_v13 }
  0x1e   :  { %69 = vmatpush.msra.mxu0 %v36_v14  ;;  %315 = vmatpush.msra.mxu3 %v36_v14 }
  0x20   :  { %70 = vmatpush.msra.mxu0 %v35_v15  ;;  %316 = vmatpush.msra.mxu3 %v35_v15 }
  0x21   :  { %71 = vmatmul.f32.vlgmr.msra.gmra.mxu0 %v27_v16  ;;  %86 = vmatmul.f32.vlgmr.msra.gmra.mxu3 %v32_v17 }
  0x29   :  { %74 = vmatmul.f32.gmra.mxu0 %v28_v18  ;;  %89 = vmatmul.f32.gmra.mxu3 %v33_v19  ;;  %v322_v18 = vld [vmem:[%s554_s6] ss:$0 sm:$0xff]  ;;  %s381_s6 = smov [#allocation2]  }
  0x2a   :  { %s271_s18 = sshll.u32 %s381_s6, 4  ;;  %s272_s18 = int_to_ptr.vmem [resolvable:$true] %s271_s18 }
  0x31   :  { %77 = vmatmul.f32.gmra.mxu0 %v29_v20  ;;  %92 = vmatmul.f32.gmra.mxu3 %v34_v21 }
  0x39   :  { %80 = vmatmul.f32.gmra.mxu0 %v30_v22 }
  0x41   :  { %83 = vmatmul.f32.gmra.mxu0 %v31_v23 }
  0x9e   :  { %v72_v29 = vpop.f32.mrf.mxu0 }
  0x9f   :  { %v73_v30 = vadd.f32 %v320_v28, %v72_v29 }
  0xa1   :  { %323 = vtanh.f32 %v73_v30 }
  0xa4   :  { %v87_v40 = vpop.f32.mrf.mxu3 }
  0xa5   :  { %v88_v44 = vadd.f32 %v320_v28, %v87_v40 }
  0xa6   :  { %v75_v31 = vpop.f32.mrf.mxu0 }
  0xa7   :  { %v324_v32 = vpop.eup %323  ;;  %v76_v33 = vadd.f32 %v320_v28, %v75_v31 }
  0xa8   :  { %285 = vmatmul.msk.f32.vlgmr.msra.gmra.mxu1 %vm112_vm0, %v324_v32 }
  0xa9   :  { %325 = vtanh.f32 %v76_v33 }
  0xac   :  { %v90_v45 = vpop.f32.mrf.mxu3 }
  0xad   :  { %v91_v47 = vadd.f32 %v320_v28, %v90_v45 }
  0xae   :  { %v78_v34 = vpop.f32.mrf.mxu0 }
  0xaf   :  { %v326_v35 = vpop.eup %325  ;;  %v79_v36 = vadd.f32 %v320_v28, %v78_v34 }
  0xb0   :  { %286 = vmatmul.msk.f32.gmra.mxu1 %vm112_vm0, %v326_v35 }
  0xb1   :  { %327 = vtanh.f32 %v79_v36 }
  0xb4   :  { %v93_v49 = vpop.f32.mrf.mxu3 }
  0xb5   :  { %v94_v50 = vadd.f32 %v320_v28, %v93_v49 }
  0xb6   :  { %v81_v37 = vpop.f32.mrf.mxu0 }
  0xb7   :  { %v328_v38 = vpop.eup %327  ;;  %v82_v39 = vadd.f32 %v320_v28, %v81_v37 }
  0xb8   :  { %287 = vmatmul.msk.f32.gmra.mxu1 %vm112_vm0, %v328_v38 }
  0xb9   :  { %329 = vtanh.f32 %v82_v39 }
  0xbe   :  { %v84_v41 = vpop.f32.mrf.mxu0 }
  0xbf   :  { %v330_v42 = vpop.eup %329  ;;  %v85_v43 = vadd.f32 %v320_v28, %v84_v41 }
  0xc0   :  { %288 = vmatmul.msk.f32.gmra.mxu1 %vm112_vm0, %v330_v42 }
  0xc1   :  { %331 = vtanh.f32 %v85_v43 }
  0xc2   :  { %333 = vtanh.f32 %v88_v44 }
  0xc3   :  { %335 = vtanh.f32 %v91_v47 }
  0xc4   :  { %337 = vtanh.f32 %v94_v50 }
  0xc7   :  { %v332_v46 = vpop.eup %331 }
  0xc8   :  { %289 = vmatmul.msk.f32.gmra.mxu1 %vm112_vm0, %v332_v46  ;;  %v334_v48 = vpop.eup %333 }
  0xc9   :  { %v336_v51 = vpop.eup %335 }
  0xca   :  { %v338_v52 = vpop.eup %337 }
  0xd0   :  { %290 = vmatmul.msk.f32.gmra.mxu1 %vm112_vm0, %v334_v48 }
  0xd8   :  { %291 = vmatmul.msk.f32.gmra.mxu1 %vm112_vm0, %v336_v51 }
  0xe0   :  { %292 = vmatmul.msk.f32.gmra.mxu1 %vm112_vm0, %v338_v52 }
 0x125   :  { %v154_v58 = vpop.f32.mrf.mxu1 }
 0x126   :  { %v155_v59 = vadd.f32 %v321_v57, %v154_v58 }
 0x128   :  { %339 = vtanh.f32 %v155_v59 }
 0x12d   :  { %v157_v60 = vpop.f32.mrf.mxu1 }
 0x12e   :  { %v340_v61 = vpop.eup %339  ;;  %v158_v62 = vadd.f32 %v321_v57, %v157_v60 }
 0x12f   :  { %293 = vmatmul.msk.f32.vlgmr.msra.gmra.mxu2 %vm112_vm0, %v340_v61 }
 0x130   :  { %341 = vtanh.f32 %v158_v62 }
 0x135   :  { %v160_v63 = vpop.f32.mrf.mxu1 }
 0x136   :  { %v342_v0 = vpop.eup %341  ;;  %v161_v1 = vadd.f32 %v321_v57, %v160_v63 }
 0x137   :  { %294 = vmatmul.msk.f32.gmra.mxu2 %vm112_vm0, %v342_v0 }
 0x138   :  { %343 = vtanh.f32 %v161_v1 }
 0x13d   :  { %v163_v2 = vpop.f32.mrf.mxu1 }
 0x13e   :  { %v344_v3 = vpop.eup %343  ;;  %v164_v4 = vadd.f32 %v321_v57, %v163_v2 }
 0x13f   :  { %295 = vmatmul.msk.f32.gmra.mxu2 %vm112_vm0, %v344_v3 }
 0x140   :  { %345 = vtanh.f32 %v164_v4 }
 0x145   :  { %v166_v5 = vpop.f32.mrf.mxu1 }
 0x146   :  { %v346_v6 = vpop.eup %345  ;;  %v167_v7 = vadd.f32 %v321_v57, %v166_v5 }
 0x147   :  { %296 = vmatmul.msk.f32.gmra.mxu2 %vm112_vm0, %v346_v6 }
 0x148   :  { %347 = vtanh.f32 %v167_v7 }
 0x14d   :  { %v169_v8 = vpop.f32.mrf.mxu1 }
 0x14e   :  { %v348_v9 = vpop.eup %347  ;;  %v170_v10 = vadd.f32 %v321_v57, %v169_v8 }
 0x14f   :  { %297 = vmatmul.msk.f32.gmra.mxu2 %vm112_vm0, %v348_v9 }
 0x150   :  { %349 = vtanh.f32 %v170_v10 }
 0x155   :  { %v172_v11 = vpop.f32.mrf.mxu1 }
 0x156   :  { %v350_v12 = vpop.eup %349  ;;  %v173_v13 = vadd.f32 %v321_v57, %v172_v11 }
 0x157   :  { %298 = vmatmul.msk.f32.gmra.mxu2 %vm112_vm0, %v350_v12 }
 0x158   :  { %351 = vtanh.f32 %v173_v13 }
 0x15d   :  { %v175_v14 = vpop.f32.mrf.mxu1 }
 0x15e   :  { %v352_v15 = vpop.eup %351  ;;  %v176_v16 = vadd.f32 %v321_v57, %v175_v14 }
 0x15f   :  { %299 = vmatmul.msk.f32.gmra.mxu2 %vm112_vm0, %v352_v15 }
 0x160   :  { %353 = vtanh.f32 %v176_v16 }
 0x166   :  { %v354_v17 = vpop.eup %353 }
 0x167   :  { %300 = vmatmul.msk.f32.gmra.mxu2 %vm112_vm0, %v354_v17 }
 0x1b2   :  { %v235_v19 = vpop.f32.mrf.mxu2 }
 0x1b3   :  { %v236_v20 = vadd.f32 %v322_v18, %v235_v19 }
 0x1b5   :  { %259 = vst [vmem:[#allocation2] sm:$0xff] %v236_v20 }
 0x1ba   :  { %v238_v21 = vpop.f32.mrf.mxu2 }
 0x1bb   :  { %v239_v22 = vadd.f32 %v322_v18, %v238_v21 }
 0x1bd   :  { %260 = vst [vmem:[#allocation2 + $0x8] sm:$0xff] %v239_v22 }
 0x1c2   :  { %v241_v23 = vpop.f32.mrf.mxu2 }
 0x1c3   :  { %v242_v24 = vadd.f32 %v322_v18, %v241_v23 }
 0x1c5   :  { %261 = vst [vmem:[#allocation2 + $0x10] sm:$0xff] %v242_v24 }
 0x1ca   :  { %v244_v25 = vpop.f32.mrf.mxu2 }
 0x1cb   :  { %v245_v26 = vadd.f32 %v322_v18, %v244_v25 }
 0x1cd   :  { %262 = vst [vmem:[#allocation2 + $0x18] sm:$0xff] %v245_v26 }
 0x1d2   :  { %v247_v27 = vpop.f32.mrf.mxu2 }
 0x1d3   :  { %v248_v28 = vadd.f32 %v322_v18, %v247_v27 }
 0x1d5   :  { %263 = vst [vmem:[#allocation2 + $0x20] sm:$0xff] %v248_v28 }
 0x1da   :  { %v250_v29 = vpop.f32.mrf.mxu2 }
 0x1db   :  { %v251_v30 = vadd.f32 %v322_v18, %v250_v29 }
 0x1dd   :  { %264 = vst [vmem:[#allocation2 + $0x28] sm:$0xff] %v251_v30 }
 0x1e2   :  { %v253_v31 = vpop.f32.mrf.mxu2 }
 0x1e3   :  { %v254_v32 = vadd.f32 %v322_v18, %v253_v31 }
 0x1e5   :  { %265 = vst [vmem:[#allocation2 + $0x30] sm:$0xff] %v254_v32 }
 0x1ea   :  { %v256_v33 = vpop.f32.mrf.mxu2 }
 0x1eb   :  { %v257_v34 = vadd.f32 %v322_v18, %v256_v33 }
 0x1ed   :  { %266 = vst [vmem:[#allocation2 + $0x38] sm:$0xff] %v257_v34 }
 0x1ee   :  { %279 = dma.vmem_to_hbm [thread:$0]  %s272_s18, 1024, %s274_s21, [#allocation3], %s382_s22, %s382_s22, %s383_s23  }
 0x1ef   :  { %379 = dma.done.wait [#allocation3], 1024  }
 0x1f0   :  { %380 = vsyncadd [#allocation3], 4294966272 }
 0x1f1   :  { %284 = vsyncpa [#allocation3], 1 }

</bundles_post_ra>
